<compile_context>
chip_gen: v5e
topology: v5e:2x2
jax: 0.10.0
libtpu: 0.0.40
codegen_flags: <defaults>
</compile_context>

<pallas_src>
import math

import jax
import jax.numpy as jnp
from jax.experimental import pallas as pl
from jax.experimental.pallas import tpu as pltpu


_CLASS_TILE = 512  # multiple of 256 (v6e/v7x MXU N dim) and of 128 lanes.


def _round_up(x, m):
    return ((x + m - 1) // m) * m


def _sublane(itemsize):
    # Sublane packing granularity: f32 -> 8, bf16/f16 -> 16, int8/fp8 -> 32.
    return {4: 8, 2: 16, 1: 32}.get(int(itemsize), 8)


def _make_head_kernel(nlayers, emb_dim):
    """acc = sum_l x_l @ W_t[l*emb_dim:(l+1)*emb_dim, :]; o = acc + b."""

    def kernel(*refs):
        x_refs = refs[:nlayers]           # each (TB, emb_dim)
        w_ref = refs[nlayers]             # (nlayers*emb_dim, TN)
        b_ref = refs[nlayers + 1]         # (1, TN)
        o_ref = refs[nlayers + 2]         # (TB, TN)
        acc_ref = refs[nlayers + 3]       # (TB, TN) f32 scratch

        acc_ref[...] = jnp.dot(x_refs[0][...], w_ref[0:emb_dim, :],
                               preferred_element_type=jnp.float32)
        for l in range(1, nlayers):       # static unroll over layers
            acc_ref[...] += jnp.dot(
                x_refs[l][...], w_ref[l * emb_dim:(l + 1) * emb_dim, :],
                preferred_element_type=jnp.float32)
        o_ref[...] = (acc_ref[...]
                      + b_ref[...].astype(jnp.float32)).astype(o_ref.dtype)

    return kernel


def prepare_head_params(weight, bias, param_dtype=None):
    """Hoisted parameter prep (run once per parameter set, not per forward).

    weight: (numClass, F) in PyTorch nn.Linear convention; bias: (numClass,).
    Returns (w_t_pad, b_pad, numClass) with w_t_pad: (F, Cpad), b_pad: (1, Cpad).
    Cpad is numClass rounded up to 128 (and to a multiple of 512 for large
    heads) so output stores are lane-dense and class tiles are full.
    param_dtype (e.g. jnp.bfloat16) optionally down-casts the stored params to
    halve weight HBM traffic / resident VMEM; the kernel always accumulates
    in f32.
    """
    C, F = weight.shape
    c_min = _round_up(C, 128)
    c_pad = c_min if c_min <= _CLASS_TILE else _round_up(c_min, _CLASS_TILE)
    w_dtype = weight.dtype if param_dtype is None else param_dtype
    b_dtype = bias.dtype if param_dtype is None else param_dtype
    w_t_pad = jnp.zeros((F, c_pad), w_dtype).at[:, :C].set(
        weight.T.astype(w_dtype))
    b_pad = jnp.zeros((1, c_pad), b_dtype).at[:, :C].set(
        bias.reshape(1, C).astype(b_dtype))
    return w_t_pad, b_pad, C


def t5_head_forward_prepared(hidden_states, w_t_pad, b_pad, num_class,
                             nlayers=1, batch_tile=512):
    """hidden_states: sequence of (B, 1, embDim) arrays; uses the last nlayers."""
    layers = list(hidden_states[-nlayers:])
    B, one, emb_dim = layers[0].shape
    assert one == 1, "t5Head expects a size-1 sequence dim (decoder step)."
    F, Cpad = w_t_pad.shape
    assert F == nlayers * emb_dim

    x_dtype = layers[0].dtype
    x_item = jnp.dtype(x_dtype).itemsize
    w_item = jnp.dtype(w_t_pad.dtype).itemsize
    b_item = jnp.dtype(b_pad.dtype).itemsize

    # Keep static per-layer weight slices sublane-aligned (unaligned slices of
    # a VMEM ref are not views and would materialize per-layer copies).
    w_sub = _sublane(w_item)
    if nlayers > 1 and emb_dim % w_sub != 0:
        # TODO(synk): pad each per-layer weight slice to the sublane tile
        # instead of rejecting; real T5 embedding dims are always aligned.
        raise ValueError(
            f"embDim={emb_dim} must be a multiple of {w_sub} for "
            f"{jnp.dtype(w_t_pad.dtype).name} weights when nlayers > 1.")

    # --- batch tiling (sublane-aligned; >=2 tiles when possible so the
    # "parallel" batch axis can shard across the two v7x TensorCores). ---
    sub = _sublane(x_item)
    batch_tile = max(sub, (batch_tile // sub) * sub)
    if B > batch_tile:
        TB = batch_tile
    elif B >= 2 * sub:
        TB = _round_up(pl.cdiv(B, 2), sub)
    else:
        TB = B
    grid_b = pl.cdiv(B, TB)

    # --- class tiling (removes the "whole weight in VMEM" requirement). ---
    TN = Cpad if Cpad <= _CLASS_TILE else _CLASS_TILE
    grid_n = pl.cdiv(Cpad, TN)
    grid = (grid_b, grid_n)
    weight_invariant = (grid_n == 1)

    # --- advisory cost estimate for XLA scheduling. ---
    cost = pl.CostEstimate(
        flops=2 * B * F * Cpad,
        transcendentals=0,
        bytes_accessed=(nlayers * B * emb_dim * x_item
                        + F * Cpad * w_item + Cpad * b_item
                        + B * Cpad * x_item))

    # --- VMEM budget derived from actual chip capacity. ---
    w_bufs = 1 if weight_invariant else 2
    vmem_need = (2 * nlayers * TB * emb_dim * x_item      # x tiles (dbl-buf)
                 + w_bufs * (F * TN * w_item + TN * b_item)
                 + 2 * TB * TN * x_item                   # out tiles (dbl-buf)
                 + TB * TN * 4)                           # f32 accumulator
    try:
        vmem_cap = pltpu.get_tpu_info().vmem_capacity_bytes
    except Exception:
        vmem_cap = 64 * 2 ** 20                           # conservative (v7x)
    vmem_limit = int(min(max(2 * vmem_need, 32 * 2 ** 20), int(0.8 * vmem_cap)))

    kernel = _make_head_kernel(nlayers, emb_dim)
    out_shape = jax.ShapeDtypeStruct((B, Cpad), x_dtype)

    def run(single_buffer_invariant):
        # Size-1 seq dim is squeezed out by the BlockSpec (no JAX reshape).
        x_spec = pl.BlockSpec((TB, None, emb_dim), lambda i, j: (i, 0, 0))
        if single_buffer_invariant:
            # Grid-invariant weight/bias: no need to double-buffer them.
            w_spec = pl.BlockSpec((F, TN), lambda i, j: (0, j),
                                  pipeline_mode=pl.Buffered(1))
            b_spec = pl.BlockSpec((1, TN), lambda i, j: (0, j),
                                  pipeline_mode=pl.Buffered(1))
        else:
            w_spec = pl.BlockSpec((F, TN), lambda i, j: (0, j))
            b_spec = pl.BlockSpec((1, TN), lambda i, j: (0, j))
        return pl.pallas_call(
            kernel,
            out_shape=out_shape,
            grid=grid,
            in_specs=[x_spec] * nlayers + [w_spec, b_spec],
            out_specs=pl.BlockSpec((TB, TN), lambda i, j: (i, j)),
            scratch_shapes=[pltpu.VMEM((TB, TN), jnp.float32)],
            compiler_params=pltpu.CompilerParams(
                dimension_semantics=("parallel", "parallel"),
                vmem_limit_bytes=vmem_limit),
            cost_estimate=cost,
        )(*layers, w_t_pad, b_pad)

    if weight_invariant:
        try:
            out_pad = run(True)
        except Exception:
            # Fallback if single-buffering is not supported by this compiler.
            out_pad = run(False)
    else:
        out_pad = run(False)

    return out_pad[:, :num_class]


def t5_head_forward(hidden_states, weight, bias, nlayers=1, batch_tile=512,
                    param_dtype=None):
    """Convenience wrapper matching the original API (params prepped per call)."""
    w_t_pad, b_pad, C = prepare_head_params(weight, bias, param_dtype)
    return t5_head_forward_prepared(hidden_states, w_t_pad, b_pad, C,
                                    nlayers=nlayers, batch_tile=batch_tile)


if __name__ == "__main__":
    # Small shapes consistent with the module's forward: hiddenStates is a
    # tuple of (batch, 1, embDim) tensors; the head uses the last `nlayers`.
    # TODO(synk): the T5 backbone (self.t5) is an external pretrained
    # transformer and is not reimplemented here; only the t5Head is a kernel.
    batch, embDim, numClass, nlayers = 8, 32, 16, 2
    in_features = nlayers * embDim

    key = jax.random.PRNGKey(0)
    k_h, k_w, k_b = jax.random.split(key, 3)

    hkeys = jax.random.split(k_h, nlayers + 1)
    hidden_states = [
        jax.random.normal(hk, (batch, 1, embDim), dtype=jnp.float32)
        for hk in hkeys
    ]

    # Deterministic parameter init mirroring torch.nn.Linear defaults.
    bound = 1.0 / math.sqrt(in_features)
    weight = jax.random.uniform(
        k_w, (numClass, in_features), minval=-bound, maxval=bound,
        dtype=jnp.float32)
    bias = jax.random.uniform(
        k_b, (numClass,), minval=-bound, maxval=bound, dtype=jnp.float32)

    # Hoisted parameter prep (done once).
    w_t_pad, b_pad, C = prepare_head_params(weight, bias)

    out = t5_head_forward_prepared(hidden_states, w_t_pad, b_pad, C,
                                   nlayers=nlayers)
    out = jax.block_until_ready(out)

    # Reference check in plain JAX.
    x_ref = jnp.squeeze(
        jnp.concatenate(hidden_states[-nlayers:], axis=-1), axis=-2)
    ref = x_ref @ weight.T + bias
    assert out.shape == (batch, numClass)
    assert jnp.allclose(out, ref, atol=1e-5, rtol=1e-5)

    # Second check: multi-step batch grid with a partial last tile.
    B2 = 20
    hkeys2 = jax.random.split(jax.random.PRNGKey(1), nlayers)
    hs2 = [jax.random.normal(hk, (B2, 1, embDim), dtype=jnp.float32)
           for hk in hkeys2]
    out2 = jax.block_until_ready(
        t5_head_forward_prepared(hs2, w_t_pad, b_pad, C,
                                 nlayers=nlayers, batch_tile=8))
    x2 = jnp.squeeze(jnp.concatenate(hs2, axis=-1), axis=-2)
    ref2 = x2 @ weight.T + bias
    assert out2.shape == (B2, numClass)
    assert jnp.allclose(out2, ref2, atol=1e-5, rtol=1e-5)

    # Third check: batch large enough to split into >=2 tiles (megacore path).
    B3 = 32
    hkeys3 = jax.random.split(jax.random.PRNGKey(2), nlayers)
    hs3 = [jax.random.normal(hk, (B3, 1, embDim), dtype=jnp.float32)
           for hk in hkeys3]
    out3 = jax.block_until_ready(
        t5_head_forward_prepared(hs3, w_t_pad, b_pad, C, nlayers=nlayers))
    x3 = jnp.squeeze(jnp.concatenate(hs3, axis=-1), axis=-2)
    ref3 = x3 @ weight.T + bias
    assert out3.shape == (B3, numClass)
    assert jnp.allclose(out3, ref3, atol=1e-5, rtol=1e-5)

    print("KERNEL_OK")
</pallas_src>

<mosaic_0001>
module attributes {stable_mosaic.version = 11 : i64} {
  func.func @kernel(%arg0: i32, %arg1: i32, %arg2: memref<8x1x32xf32, #tpu.memory_space<vmem>>, %arg3: memref<8x1x32xf32, #tpu.memory_space<vmem>>, %arg4: memref<64x128xf32, #tpu.memory_space<vmem>>, %arg5: memref<1x128xf32, #tpu.memory_space<vmem>>, %arg6: memref<8x128xf32, #tpu.memory_space<vmem>>, %arg7: memref<8x128xf32, #tpu.memory_space<vmem>>) attributes {dimension_semantics = [#tpu.dimension_semantics<parallel>, #tpu.dimension_semantics<parallel>], iteration_bounds = array<i64: 1, 1>, scalar_prefetch = 0 : i64, scratch_operands = 1 : i64, tpu.core_type = #tpu.core_type<tc>, window_params = [{transform_indices = @transform_0, window_bounds = array<i64: 8, 1, 32>}, {transform_indices = @transform_1, window_bounds = array<i64: 8, 1, 32>}, {pipeline_mode = #tpu.pipeline_mode<synchronous>, transform_indices = @transform_2, window_bounds = array<i64: 64, 128>}, {pipeline_mode = #tpu.pipeline_mode<synchronous>, transform_indices = @transform_3, window_bounds = array<i64: 1, 128>}, {transform_indices = @transform_4, window_bounds = array<i64: 8, 128>}]} {
    %c0 = arith.constant 0 : index
    %c0_0 = arith.constant 0 : index
    %c0_1 = arith.constant 0 : index
    %0 = vector.load %arg2[%c0, %c0_0, %c0_1] : memref<8x1x32xf32, #tpu.memory_space<vmem>>, vector<8x1x32xf32>
    %1 = vector.shape_cast %0 : vector<8x1x32xf32> to vector<8x32xf32>
    %c0_2 = arith.constant 0 : index
    %c0_3 = arith.constant 0 : index
    %2 = vector.load %arg4[%c0_2, %c0_3] : memref<64x128xf32, #tpu.memory_space<vmem>>, vector<32x128xf32>
    %cst = arith.constant dense<0.000000e+00> : vector<8x128xf32>
    %3 = tpu.matmul %1, %2, %cst {dimension_numbers = #tpu.dot_dimension_numbers<[1], [0], [0], [1], [0, 0, 1, 1], [], []>} : vector<8x32xf32>, vector<32x128xf32>, vector<8x128xf32> -> vector<8x128xf32>
    %c0_4 = arith.constant 0 : index
    %c0_5 = arith.constant 0 : index
    %4 = vector.load %arg7[%c0_4, %c0_5] : memref<8x128xf32, #tpu.memory_space<vmem>>, vector<8x128xf32>
    tpu.vector_store %arg7[%c0_4, %c0_5], %3 {strides = array<i32>} : memref<8x128xf32, #tpu.memory_space<vmem>>, vector<8x128xf32>,
    %c0_6 = arith.constant 0 : index
    %c0_7 = arith.constant 0 : index
    %5 = vector.load %arg7[%c0_6, %c0_7] : memref<8x128xf32, #tpu.memory_space<vmem>>, vector<8x128xf32>
    %c0_8 = arith.constant 0 : index
    %c0_9 = arith.constant 0 : index
    %c0_10 = arith.constant 0 : index
    %6 = vector.load %arg3[%c0_8, %c0_9, %c0_10] : memref<8x1x32xf32, #tpu.memory_space<vmem>>, vector<8x1x32xf32>
    %7 = vector.shape_cast %6 : vector<8x1x32xf32> to vector<8x32xf32>
    %c32 = arith.constant 32 : index
    %c0_11 = arith.constant 0 : index
    %8 = vector.load %arg4[%c32, %c0_11] : memref<64x128xf32, #tpu.memory_space<vmem>>, vector<32x128xf32>
    %cst_12 = arith.constant dense<0.000000e+00> : vector<8x128xf32>
    %9 = tpu.matmul %7, %8, %cst_12 {dimension_numbers = #tpu.dot_dimension_numbers<[1], [0], [0], [1], [0, 0, 1, 1], [], []>} : vector<8x32xf32>, vector<32x128xf32>, vector<8x128xf32> -> vector<8x128xf32>
    %10 = arith.addf %5, %9 : vector<8x128xf32>
    %c0_13 = arith.constant 0 : index
    %c0_14 = arith.constant 0 : index
    %11 = vector.load %arg7[%c0_13, %c0_14] : memref<8x128xf32, #tpu.memory_space<vmem>>, vector<8x128xf32>
    tpu.vector_store %arg7[%c0_13, %c0_14], %10 {strides = array<i32>} : memref<8x128xf32, #tpu.memory_space<vmem>>, vector<8x128xf32>,
    %c0_15 = arith.constant 0 : index
    %c0_16 = arith.constant 0 : index
    %12 = vector.load %arg7[%c0_15, %c0_16] : memref<8x128xf32, #tpu.memory_space<vmem>>, vector<8x128xf32>
    %c0_17 = arith.constant 0 : index
    %c0_18 = arith.constant 0 : index
    %13 = vector.load %arg5[%c0_17, %c0_18] : memref<1x128xf32, #tpu.memory_space<vmem>>, vector<1x128xf32>
    %14 = vector.broadcast %13 : vector<1x128xf32> to vector<8x128xf32>
    %15 = arith.addf %12, %14 : vector<8x128xf32>
    %c0_19 = arith.constant 0 : index
    %c0_20 = arith.constant 0 : index
    %16 = vector.load %arg6[%c0_19, %c0_20] : memref<8x128xf32, #tpu.memory_space<vmem>>, vector<8x128xf32>
    tpu.vector_store %arg6[%c0_19, %c0_20], %15 {strides = array<i32>} : memref<8x128xf32, #tpu.memory_space<vmem>>, vector<8x128xf32>,
    return
  }
  func.func @transform_0(%arg0: i32, %arg1: i32) -> (i32, i32, i32) {
    %c0_i32 = arith.constant 0 : i32
    %c0_i32_0 = arith.constant 0 : i32
    %c0_i32_1 = arith.constant 0 : i32
    return %arg0, %c0_i32, %c0_i32_0 : i32, i32, i32
  }
  func.func @transform_1(%arg0: i32, %arg1: i32) -> (i32, i32, i32) {
    %c0_i32 = arith.constant 0 : i32
    %c0_i32_0 = arith.constant 0 : i32
    %c0_i32_1 = arith.constant 0 : i32
    return %arg0, %c0_i32, %c0_i32_0 : i32, i32, i32
  }
  func.func @transform_2(%arg0: i32, %arg1: i32) -> (i32, i32) {
    %c0_i32 = arith.constant 0 : i32
    %c0_i32_0 = arith.constant 0 : i32
    return %c0_i32, %arg1 : i32, i32
  }
  func.func @transform_3(%arg0: i32, %arg1: i32) -> (i32, i32) {
    %c0_i32 = arith.constant 0 : i32
    %c0_i32_0 = arith.constant 0 : i32
    return %c0_i32, %arg1 : i32, i32
  }
  func.func @transform_4(%arg0: i32, %arg1: i32) -> (i32, i32) {
    %c0_i32 = arith.constant 0 : i32
    return %arg0, %arg1 : i32, i32
  }
}

module attributes {stable_mosaic.version = 11 : i64} {
  func.func @kernel(%arg0: i32, %arg1: i32, %arg2: memref<8x1x32xf32, #tpu.memory_space<vmem>>, %arg3: memref<8x1x32xf32, #tpu.memory_space<vmem>>, %arg4: memref<64x128xf32, #tpu.memory_space<vmem>>, %arg5: memref<1x128xf32, #tpu.memory_space<vmem>>, %arg6: memref<8x128xf32, #tpu.memory_space<vmem>>, %arg7: memref<8x128xf32, #tpu.memory_space<vmem>>) attributes {dimension_semantics = [#tpu.dimension_semantics<parallel>, #tpu.dimension_semantics<parallel>], iteration_bounds = array<i64: 1, 1>, scalar_prefetch = 0 : i64, scratch_operands = 1 : i64, tpu.core_type = #tpu.core_type<tc>, window_params = [{transform_indices = @transform_0, window_bounds = array<i64: 8, 1, 32>}, {transform_indices = @transform_1, window_bounds = array<i64: 8, 1, 32>}, {transform_indices = @transform_2, window_bounds = array<i64: 64, 128>}, {transform_indices = @transform_3, window_bounds = array<i64: 1, 128>}, {transform_indices = @transform_4, window_bounds = array<i64: 8, 128>}]} {
    %c0 = arith.constant 0 : index
    %c0_0 = arith.constant 0 : index
    %c0_1 = arith.constant 0 : index
    %0 = vector.load %arg2[%c0, %c0_0, %c0_1] : memref<8x1x32xf32, #tpu.memory_space<vmem>>, vector<8x1x32xf32>
    %1 = vector.shape_cast %0 : vector<8x1x32xf32> to vector<8x32xf32>
    %c0_2 = arith.constant 0 : index
    %c0_3 = arith.constant 0 : index
    %2 = vector.load %arg4[%c0_2, %c0_3] : memref<64x128xf32, #tpu.memory_space<vmem>>, vector<32x128xf32>
    %cst = arith.constant dense<0.000000e+00> : vector<8x128xf32>
    %3 = tpu.matmul %1, %2, %cst {dimension_numbers = #tpu.dot_dimension_numbers<[1], [0], [0], [1], [0, 0, 1, 1], [], []>} : vector<8x32xf32>, vector<32x128xf32>, vector<8x128xf32> -> vector<8x128xf32>
    %c0_4 = arith.constant 0 : index
    %c0_5 = arith.constant 0 : index
    %4 = vector.load %arg7[%c0_4, %c0_5] : memref<8x128xf32, #tpu.memory_space<vmem>>, vector<8x128xf32>
    tpu.vector_store %arg7[%c0_4, %c0_5], %3 {strides = array<i32>} : memref<8x128xf32, #tpu.memory_space<vmem>>, vector<8x128xf32>,
    %c0_6 = arith.constant 0 : index
    %c0_7 = arith.constant 0 : index
    %5 = vector.load %arg7[%c0_6, %c0_7] : memref<8x128xf32, #tpu.memory_space<vmem>>, vector<8x128xf32>
    %c0_8 = arith.constant 0 : index
    %c0_9 = arith.constant 0 : index
    %c0_10 = arith.constant 0 : index
    %6 = vector.load %arg3[%c0_8, %c0_9, %c0_10] : memref<8x1x32xf32, #tpu.memory_space<vmem>>, vector<8x1x32xf32>
    %7 = vector.shape_cast %6 : vector<8x1x32xf32> to vector<8x32xf32>
    %c32 = arith.constant 32 : index
    %c0_11 = arith.constant 0 : index
    %8 = vector.load %arg4[%c32, %c0_11] : memref<64x128xf32, #tpu.memory_space<vmem>>, vector<32x128xf32>
    %cst_12 = arith.constant dense<0.000000e+00> : vector<8x128xf32>
    %9 = tpu.matmul %7, %8, %cst_12 {dimension_numbers = #tpu.dot_dimension_numbers<[1], [0], [0], [1], [0, 0, 1, 1], [], []>} : vector<8x32xf32>, vector<32x128xf32>, vector<8x128xf32> -> vector<8x128xf32>
    %10 = arith.addf %5, %9 : vector<8x128xf32>
    %c0_13 = arith.constant 0 : index
    %c0_14 = arith.constant 0 : index
    %11 = vector.load %arg7[%c0_13, %c0_14] : memref<8x128xf32, #tpu.memory_space<vmem>>, vector<8x128xf32>
    tpu.vector_store %arg7[%c0_13, %c0_14], %10 {strides = array<i32>} : memref<8x128xf32, #tpu.memory_space<vmem>>, vector<8x128xf32>,
    %c0_15 = arith.constant 0 : index
    %c0_16 = arith.constant 0 : index
    %12 = vector.load %arg7[%c0_15, %c0_16] : memref<8x128xf32, #tpu.memory_space<vmem>>, vector<8x128xf32>
    %c0_17 = arith.constant 0 : index
    %c0_18 = arith.constant 0 : index
    %13 = vector.load %arg5[%c0_17, %c0_18] : memref<1x128xf32, #tpu.memory_space<vmem>>, vector<1x128xf32>
    %14 = vector.broadcast %13 : vector<1x128xf32> to vector<8x128xf32>
    %15 = arith.addf %12, %14 : vector<8x128xf32>
    %c0_19 = arith.constant 0 : index
    %c0_20 = arith.constant 0 : index
    %16 = vector.load %arg6[%c0_19, %c0_20] : memref<8x128xf32, #tpu.memory_space<vmem>>, vector<8x128xf32>
    tpu.vector_store %arg6[%c0_19, %c0_20], %15 {strides = array<i32>} : memref<8x128xf32, #tpu.memory_space<vmem>>, vector<8x128xf32>,
    return
  }
  func.func @transform_0(%arg0: i32, %arg1: i32) -> (i32, i32, i32) {
    %c0_i32 = arith.constant 0 : i32
    %c0_i32_0 = arith.constant 0 : i32
    %c0_i32_1 = arith.constant 0 : i32
    return %arg0, %c0_i32, %c0_i32_0 : i32, i32, i32
  }
  func.func @transform_1(%arg0: i32, %arg1: i32) -> (i32, i32, i32) {
    %c0_i32 = arith.constant 0 : i32
    %c0_i32_0 = arith.constant 0 : i32
    %c0_i32_1 = arith.constant 0 : i32
    return %arg0, %c0_i32, %c0_i32_0 : i32, i32, i32
  }
  func.func @transform_2(%arg0: i32, %arg1: i32) -> (i32, i32) {
    %c0_i32 = arith.constant 0 : i32
    %c0_i32_0 = arith.constant 0 : i32
    return %c0_i32, %arg1 : i32, i32
  }
  func.func @transform_3(%arg0: i32, %arg1: i32) -> (i32, i32) {
    %c0_i32 = arith.constant 0 : i32
    %c0_i32_0 = arith.constant 0 : i32
    return %c0_i32, %arg1 : i32, i32
  }
  func.func @transform_4(%arg0: i32, %arg1: i32) -> (i32, i32) {
    %c0_i32 = arith.constant 0 : i32
    return %arg0, %arg1 : i32, i32
  }
}

</mosaic_0001>

<bundles_post_ra>
// kernel: tpu_custom_call.1
= control target key start
LH: loop header
LB: loop body
LE: loop exit
PB: predicated region body
PF: predicated region fallthrough
CT: control target
= control target key end

     0   :  { %9 = vsyncpa [#allocation4], 0  ;;  %s374_s0 = inlined_call_operand.hbm [shape: f32[8,1,32], index: 0, kind: input, shape index: {}]   ;;  %s375_s1 = inlined_call_operand.hbm [shape: f32[8,1,32], index: 1, kind: input, shape index: {}]   ;;  %s376_s2 = inlined_call_operand.hbm [shape: f32[64,128], index: 2, kind: input, shape index: {}]   ;;  %s377_s3 = inlined_call_operand.vmem [shape: f32[1,128], index: 3, kind: input, shape index: {}]   ;;  %s378_s4 = inlined_call_operand.hbm [shape: f32[8,128], index: 4, kind: output, shape index: {}]  }
   0x1   :  { %10 = vsyncpa [#allocation7], 0 }
   0x2   :  { %11 = vsyncpa [#allocation5], 0  ;;  %s29_s17 = sshll.u32 %s375_s1, 4  ;;  %s324_s18 = smov [#allocation6]   ;;  %s30_s17 = int_to_ptr.hbm [resolvable:$true] %s29_s17 }
   0x3   :  { %s31_s19 = sshll.u32 %s324_s18, 4  ;;  %s16_s22 = sshll.u32 %s374_s0, 4  ;;  %s32_s19 = int_to_ptr.vmem [resolvable:$true] %s31_s19  ;;  %s17_s22 = int_to_ptr.hbm [resolvable:$true] %s16_s22 }
   0x4   :  { %s325_s23 = smov 16   ;;  %s326_s24 = smov 1  }
   0x5   :  { %37 = dma.hbm_to_vmem [thread:$0]  %s30_s17, 128, %s32_s19, [#allocation7], %s325_s23, %s325_s23, %s326_s24  }
   0x6   :  { %s327_s25 = smov [#allocation3]   ;;  %s42_s29 = sshll.u32 %s376_s2, 4  ;;  %s43_s29 = int_to_ptr.hbm [resolvable:$true] %s42_s29 }
   0x7   :  { %s18_s26 = sshll.u32 %s327_s25, 4  ;;  %s328_s1 = smov [#allocation8]   ;;  %s19_s26 = int_to_ptr.vmem [resolvable:$true] %s18_s26 }
   0x8   :  { %24 = dma.hbm_to_vmem [thread:$0]  %s17_s22, 128, %s19_s26, [#allocation4], %s325_s23, %s325_s23, %s326_s24  }
   0x9   :  { %s44_s30 = sshll.u32 %s328_s1, 4  ;;  %s329_s5 = smov 128   ;;  %s45_s30 = int_to_ptr.vmem [resolvable:$true] %s44_s30 }
   0xa   :  { %s330_s6 = smov 8  }
   0xb   :  { %50 = dma.hbm_to_vmem [thread:$0]  %s43_s29, 1024, %s45_s30, [#allocation7], %s329_s5, %s329_s5, %s330_s6  }
   0xc   :  { %318 = dma.done.wait [#allocation4], 128  }
   0xd   :  { %319 = vsyncadd [#allocation4], 4294967168 }
   0xe   :  { %320 = dma.done.wait [#allocation7], 1152  }
   0xf   :  { %321 = vsyncadd [#allocation7], 4294966144  ;;  %v76_v0 = vld [vmem:[#allocation8 + $0x18] sm:$0xff]  ;;  %v75_v2 = vld [vmem:[#allocation8 + $0x10] sm:$0xff]  ;;  %vm101_vm0 = vcmask 261120   ;;  %s331_s7 = smov [#allocation9]  }
  0x10   :  { %v137_v1 = vld [vmem:[#allocation8 + $0x38] sm:$0xff]  ;;  %116 = vmatpush.msra.mxu0 %v76_v0  ;;  %v136_v3 = vld [vmem:[#allocation8 + $0x30] sm:$0xff]  ;;  %v74_v4 = vld [vmem:[#allocation8 + $0x8] sm:$0xff]  ;;  %s198_s8 = sshll.u32 %s331_s7, 4  ;;  %s200_s11 = sshll.u32 %s378_s4, 4  ;;  %s199_s8 = int_to_ptr.vmem [resolvable:$true] %s198_s8  ;;  %s201_s11 = int_to_ptr.hbm [resolvable:$true] %s200_s11 }
  0x11   :  { %176 = vmatpush.msra.mxu1 %v137_v1  ;;  %v135_v5 = vld [vmem:[#allocation8 + $0x28] sm:$0xff]  ;;  %v65_v6 = vld [vmem:[#allocation3] sm:$0x1]  ;;  %v66_v7 = vld [vmem:[#allocation3 + $0x1] sm:$0x1] }
  0x12   :  { %117 = vmatpush.msra.mxu0 %v75_v2  ;;  %v73_v8 = vld [vmem:[#allocation8] sm:$0xff]  ;;  %v67_v10 = vld [vmem:[#allocation3 + $0x2] sm:$0x1]  ;;  %v68_v11 = vld [vmem:[#allocation3 + $0x3] sm:$0x1] }
  0x13   :  { %177 = vmatpush.msra.mxu1 %v136_v3  ;;  %v134_v9 = vld [vmem:[#allocation8 + $0x20] sm:$0xff]  ;;  %85 = vst [vmem:[#allocation1] ss:$9 sm:$0xff] %v65_v6  ;;  %v69_v12 = vld [vmem:[#allocation3 + $0x4] sm:$0x1] }
  0x14   :  { %118 = vmatpush.msra.mxu0 %v74_v4  ;;  %87 = vst [vmem:[#allocation1 + $0x1] ss:$9 sm:$0xff] %v66_v7  ;;  %v70_v13 = vld [vmem:[#allocation3 + $0x5] sm:$0x1]  ;;  %v71_v14 = vld [vmem:[#allocation3 + $0x6] sm:$0x1] }
  0x15   :  { %178 = vmatpush.msra.mxu1 %v135_v5  ;;  %89 = vst [vmem:[#allocation1 + $0x2] ss:$9 sm:$0xff] %v67_v10  ;;  %v72_v15 = vld [vmem:[#allocation3 + $0x7] sm:$0x1]  ;;  %v126_v16 = vld [vmem:[#allocation6] sm:$0x1] }
  0x16   :  { %119 = vmatpush.msra.mxu0 %v73_v8  ;;  %91 = vst [vmem:[#allocation1 + $0x3] ss:$9 sm:$0xff] %v68_v11  ;;  %v127_v17 = vld [vmem:[#allocation6 + $0x1] sm:$0x1]  ;;  %v128_v19 = vld [vmem:[#allocation6 + $0x2] sm:$0x1] }
  0x17   :  { %179 = vmatpush.msra.mxu1 %v134_v9  ;;  %93 = vst [vmem:[#allocation1 + $0x4] ss:$9 sm:$0xff] %v69_v12  ;;  %v129_v20 = vld [vmem:[#allocation6 + $0x3] sm:$0x1]  ;;  %v130_v21 = vld [vmem:[#allocation6 + $0x4] sm:$0x1] }
  0x18   :  { %95 = vst [vmem:[#allocation1 + $0x5] ss:$9 sm:$0xff] %v70_v13  ;;  %v131_v22 = vld [vmem:[#allocation6 + $0x5] sm:$0x1]  ;;  %v132_v23 = vld [vmem:[#allocation6 + $0x6] sm:$0x1] }
  0x19   :  { %97 = vst [vmem:[#allocation1 + $0x6] ss:$9 sm:$0xff] %v71_v14  ;;  %v133_v24 = vld [vmem:[#allocation6 + $0x7] sm:$0x1]  ;;  %v221_v27 = vld [vmem:[%s377_s3] ss:$0 sm:$0xff] }
  0x1a   :  { %99 = vst [vmem:[#allocation1 + $0x7] ss:$9 sm:$0xff] %v72_v15 }
  0x21   :  { %v100_v18 = vld [vmem:[#allocation1] sm:$0xff] }
  0x22   :  { %211 = vmatmul.msk.f32.vlgmr.msra.gmra.mxu0 %vm101_vm0, %v100_v18  ;;  %146 = vst [vmem:[#allocation1] ss:$9 sm:$0xff] %v126_v16 }
  0x23   :  { %148 = vst [vmem:[#allocation1 + $0x1] ss:$9 sm:$0xff] %v127_v17 }
  0x24   :  { %150 = vst [vmem:[#allocation1 + $0x2] ss:$9 sm:$0xff] %v128_v19 }
  0x25   :  { %152 = vst [vmem:[#allocation1 + $0x3] ss:$9 sm:$0xff] %v129_v20 }
  0x26   :  { %154 = vst [vmem:[#allocation1 + $0x4] ss:$9 sm:$0xff] %v130_v21 }
  0x27   :  { %156 = vst [vmem:[#allocation1 + $0x5] ss:$9 sm:$0xff] %v131_v22 }
  0x28   :  { %158 = vst [vmem:[#allocation1 + $0x6] ss:$9 sm:$0xff] %v132_v23 }
  0x29   :  { %160 = vst [vmem:[#allocation1 + $0x7] ss:$9 sm:$0xff] %v133_v24 }
  0x30   :  { %v161_v25 = vld [vmem:[#allocation1] sm:$0xff] }
  0x31   :  { %212 = vmatmul.msk.f32.vlgmr.msra.gmra.mxu1 %vm101_vm0, %v161_v25 }
  0x9f   :  { %v121_v26 = vpop.f32.mrf.mxu0 }
  0xae   :  { %v181_v28 = vpop.f32.mrf.mxu1 }
  0xaf   :  { %v184_v29 = vadd.f32 %v181_v28, %v121_v26 }
  0xb1   :  { %v191_v30 = vadd.f32 %v221_v27, %v184_v29 }
  0xb3   :  { %192 = vst [vmem:[#allocation9] sm:$0xff] %v191_v30 }
  0xb4   :  { %203 = dma.vmem_to_hbm [thread:$0]  %s199_s8, 128, %s201_s11, [#allocation5]  }
  0xb5   :  { %322 = dma.done.wait [#allocation5], 128  }
  0xb6   :  { %323 = vsyncadd [#allocation5], 4294967168 }
  0xb7   :  { %208 = vsyncpa [#allocation4], 1 }
  0xb8   :  { %209 = vsyncpa [#allocation7], 1 }
  0xb9   :  { %210 = vsyncpa [#allocation5], 1 }

// kernel: tpu_custom_call.1
= control target key start
LH: loop header
LB: loop body
LE: loop exit
PB: predicated region body
PF: predicated region fallthrough
CT: control target
= control target key end

     0   :  { %9 = vsyncpa [#allocation4], 0  ;;  %s374_s0 = inlined_call_operand.hbm [shape: f32[8,1,32], index: 0, kind: input, shape index: {}]   ;;  %s375_s1 = inlined_call_operand.hbm [shape: f32[8,1,32], index: 1, kind: input, shape index: {}]   ;;  %s376_s2 = inlined_call_operand.hbm [shape: f32[64,128], index: 2, kind: input, shape index: {}]   ;;  %s377_s3 = inlined_call_operand.vmem [shape: f32[1,128], index: 3, kind: input, shape index: {}]   ;;  %s378_s4 = inlined_call_operand.hbm [shape: f32[8,128], index: 4, kind: output, shape index: {}]  }
   0x1   :  { %10 = vsyncpa [#allocation7], 0 }
   0x2   :  { %11 = vsyncpa [#allocation5], 0  ;;  %s29_s17 = sshll.u32 %s375_s1, 4  ;;  %s324_s18 = smov [#allocation6]   ;;  %s30_s17 = int_to_ptr.hbm [resolvable:$true] %s29_s17 }
   0x3   :  { %s31_s19 = sshll.u32 %s324_s18, 4  ;;  %s16_s22 = sshll.u32 %s374_s0, 4  ;;  %s32_s19 = int_to_ptr.vmem [resolvable:$true] %s31_s19  ;;  %s17_s22 = int_to_ptr.hbm [resolvable:$true] %s16_s22 }
   0x4   :  { %s325_s23 = smov 16   ;;  %s326_s24 = smov 1  }
   0x5   :  { %37 = dma.hbm_to_vmem [thread:$0]  %s30_s17, 128, %s32_s19, [#allocation7], %s325_s23, %s325_s23, %s326_s24  }
   0x6   :  { %s327_s25 = smov [#allocation3]   ;;  %s42_s29 = sshll.u32 %s376_s2, 4  ;;  %s43_s29 = int_to_ptr.hbm [resolvable:$true] %s42_s29 }
   0x7   :  { %s18_s26 = sshll.u32 %s327_s25, 4  ;;  %s328_s1 = smov [#allocation8]   ;;  %s19_s26 = int_to_ptr.vmem [resolvable:$true] %s18_s26 }
   0x8   :  { %24 = dma.hbm_to_vmem [thread:$0]  %s17_s22, 128, %s19_s26, [#allocation4], %s325_s23, %s325_s23, %s326_s24  }
   0x9   :  { %s44_s30 = sshll.u32 %s328_s1, 4  ;;  %s329_s5 = smov 128   ;;  %s45_s30 = int_to_ptr.vmem [resolvable:$true] %s44_s30 }
   0xa   :  { %s330_s6 = smov 8  }
   0xb   :  { %50 = dma.hbm_to_vmem [thread:$0]  %s43_s29, 1024, %s45_s30, [#allocation7], %s329_s5, %s329_s5, %s330_s6  }
   0xc   :  { %318 = dma.done.wait [#allocation4], 128  }
   0xd   :  { %319 = vsyncadd [#allocation4], 4294967168 }
   0xe   :  { %320 = dma.done.wait [#allocation7], 1152  }
   0xf   :  { %321 = vsyncadd [#allocation7], 4294966144  ;;  %v76_v0 = vld [vmem:[#allocation8 + $0x18] sm:$0xff]  ;;  %v75_v2 = vld [vmem:[#allocation8 + $0x10] sm:$0xff]  ;;  %vm101_vm0 = vcmask 261120   ;;  %s331_s7 = smov [#allocation9]  }
  0x10   :  { %v137_v1 = vld [vmem:[#allocation8 + $0x38] sm:$0xff]  ;;  %116 = vmatpush.msra.mxu0 %v76_v0  ;;  %v136_v3 = vld [vmem:[#allocation8 + $0x30] sm:$0xff]  ;;  %v74_v4 = vld [vmem:[#allocation8 + $0x8] sm:$0xff]  ;;  %s198_s8 = sshll.u32 %s331_s7, 4  ;;  %s200_s11 = sshll.u32 %s378_s4, 4  ;;  %s199_s8 = int_to_ptr.vmem [resolvable:$true] %s198_s8  ;;  %s201_s11 = int_to_ptr.hbm [resolvable:$true] %s200_s11 }
  0x11   :  { %176 = vmatpush.msra.mxu1 %v137_v1  ;;  %v135_v5 = vld [vmem:[#allocation8 + $0x28] sm:$0xff]  ;;  %v65_v6 = vld [vmem:[#allocation3] sm:$0x1]  ;;  %v66_v7 = vld [vmem:[#allocation3 + $0x1] sm:$0x1] }
  0x12   :  { %117 = vmatpush.msra.mxu0 %v75_v2  ;;  %v73_v8 = vld [vmem:[#allocation8] sm:$0xff]  ;;  %v67_v10 = vld [vmem:[#allocation3 + $0x2] sm:$0x1]  ;;  %v68_v11 = vld [vmem:[#allocation3 + $0x3] sm:$0x1] }
  0x13   :  { %177 = vmatpush.msra.mxu1 %v136_v3  ;;  %v134_v9 = vld [vmem:[#allocation8 + $0x20] sm:$0xff]  ;;  %85 = vst [vmem:[#allocation1] ss:$9 sm:$0xff] %v65_v6  ;;  %v69_v12 = vld [vmem:[#allocation3 + $0x4] sm:$0x1] }
  0x14   :  { %118 = vmatpush.msra.mxu0 %v74_v4  ;;  %87 = vst [vmem:[#allocation1 + $0x1] ss:$9 sm:$0xff] %v66_v7  ;;  %v70_v13 = vld [vmem:[#allocation3 + $0x5] sm:$0x1]  ;;  %v71_v14 = vld [vmem:[#allocation3 + $0x6] sm:$0x1] }
  0x15   :  { %178 = vmatpush.msra.mxu1 %v135_v5  ;;  %89 = vst [vmem:[#allocation1 + $0x2] ss:$9 sm:$0xff] %v67_v10  ;;  %v72_v15 = vld [vmem:[#allocation3 + $0x7] sm:$0x1]  ;;  %v126_v16 = vld [vmem:[#allocation6] sm:$0x1] }
  0x16   :  { %119 = vmatpush.msra.mxu0 %v73_v8  ;;  %91 = vst [vmem:[#allocation1 + $0x3] ss:$9 sm:$0xff] %v68_v11  ;;  %v127_v17 = vld [vmem:[#allocation6 + $0x1] sm:$0x1]  ;;  %v128_v19 = vld [vmem:[#allocation6 + $0x2] sm:$0x1] }
  0x17   :  { %179 = vmatpush.msra.mxu1 %v134_v9  ;;  %93 = vst [vmem:[#allocation1 + $0x4] ss:$9 sm:$0xff] %v69_v12  ;;  %v129_v20 = vld [vmem:[#allocation6 + $0x3] sm:$0x1]  ;;  %v130_v21 = vld [vmem:[#allocation6 + $0x4] sm:$0x1] }
  0x18   :  { %95 = vst [vmem:[#allocation1 + $0x5] ss:$9 sm:$0xff] %v70_v13  ;;  %v131_v22 = vld [vmem:[#allocation6 + $0x5] sm:$0x1]  ;;  %v132_v23 = vld [vmem:[#allocation6 + $0x6] sm:$0x1] }
  0x19   :  { %97 = vst [vmem:[#allocation1 + $0x6] ss:$9 sm:$0xff] %v71_v14  ;;  %v133_v24 = vld [vmem:[#allocation6 + $0x7] sm:$0x1]  ;;  %v221_v27 = vld [vmem:[%s377_s3] ss:$0 sm:$0xff] }
  0x1a   :  { %99 = vst [vmem:[#allocation1 + $0x7] ss:$9 sm:$0xff] %v72_v15 }
  0x21   :  { %v100_v18 = vld [vmem:[#allocation1] sm:$0xff] }
  0x22   :  { %211 = vmatmul.msk.f32.vlgmr.msra.gmra.mxu0 %vm101_vm0, %v100_v18  ;;  %146 = vst [vmem:[#allocation1] ss:$9 sm:$0xff] %v126_v16 }
  0x23   :  { %148 = vst [vmem:[#allocation1 + $0x1] ss:$9 sm:$0xff] %v127_v17 }
  0x24   :  { %150 = vst [vmem:[#allocation1 + $0x2] ss:$9 sm:$0xff] %v128_v19 }
  0x25   :  { %152 = vst [vmem:[#allocation1 + $0x3] ss:$9 sm:$0xff] %v129_v20 }
  0x26   :  { %154 = vst [vmem:[#allocation1 + $0x4] ss:$9 sm:$0xff] %v130_v21 }
  0x27   :  { %156 = vst [vmem:[#allocation1 + $0x5] ss:$9 sm:$0xff] %v131_v22 }
  0x28   :  { %158 = vst [vmem:[#allocation1 + $0x6] ss:$9 sm:$0xff] %v132_v23 }
  0x29   :  { %160 = vst [vmem:[#allocation1 + $0x7] ss:$9 sm:$0xff] %v133_v24 }
  0x30   :  { %v161_v25 = vld [vmem:[#allocation1] sm:$0xff] }
  0x31   :  { %212 = vmatmul.msk.f32.vlgmr.msra.gmra.mxu1 %vm101_vm0, %v161_v25 }
  0x9f   :  { %v121_v26 = vpop.f32.mrf.mxu0 }
  0xae   :  { %v181_v28 = vpop.f32.mrf.mxu1 }
  0xaf   :  { %v184_v29 = vadd.f32 %v181_v28, %v121_v26 }
  0xb1   :  { %v191_v30 = vadd.f32 %v221_v27, %v184_v29 }
  0xb3   :  { %192 = vst [vmem:[#allocation9] sm:$0xff] %v191_v30 }
  0xb4   :  { %203 = dma.vmem_to_hbm [thread:$0]  %s199_s8, 128, %s201_s11, [#allocation5]  }
  0xb5   :  { %322 = dma.done.wait [#allocation5], 128  }
  0xb6   :  { %323 = vsyncadd [#allocation5], 4294967168 }
  0xb7   :  { %208 = vsyncpa [#allocation4], 1 }
  0xb8   :  { %209 = vsyncpa [#allocation7], 1 }
  0xb9   :  { %210 = vsyncpa [#allocation5], 1 }

</bundles_post_ra>
